<compile_context>
chip_gen: v7x
topology: tpu7x:2x2x1
jax: 0.10.0
libtpu: 0.0.40
codegen_flags: <defaults>
</compile_context>

<pallas_src>
import functools

import jax
import jax.numpy as jnp
from jax.experimental import pallas as pl
from jax.experimental.pallas import tpu as pltpu


def _round_up(x, m):
    return (x + m - 1) // m * m


def _critic_kernel(x_ref, w1_ref, b1_ref, w2_ref, b2_ref, w3t_ref, b3t_ref,
                   o_ref, *, matmul_dtype):
    # One batch tile of packed activations; all params are VMEM-resident.
    x = x_ref[...]                                   # (tile_b, in_dim), matmul_dtype

    # Layers 1-2: MXU matmuls with fp32 accumulation; bias + ReLU in fp32 on the
    # VPU (v5e has no bf16 VPU).
    h1 = jnp.maximum(
        jnp.dot(x, w1_ref[...], preferred_element_type=jnp.float32)
        + b1_ref[...], 0.0)
    h2 = jnp.maximum(
        jnp.dot(h1.astype(matmul_dtype), w2_ref[...],
                preferred_element_type=jnp.float32)
        + b2_ref[...], 0.0)

    # Layer 3 computed transposed: (out, hidden) @ (hidden, tile_b).
    # The h2 transpose runs on the XLU (idle here); the result is lane-dense
    # (batch on the lane axis), so the store + output DMA are dense.
    h2t = h2.astype(matmul_dtype).T                  # (hidden, tile_b)
    o = (jnp.dot(w3t_ref[...], h2t, preferred_element_type=jnp.float32)
         + b3t_ref[...])                             # (out, tile_b)
    o_ref[...] = o.astype(o_ref.dtype)


def prepare_critic_params(params, matmul_dtype=jnp.bfloat16):
    """One-time parameter prep (hoisted out of the per-call path).

    Weights are cast to the MXU dtype (bf16 default: safe on v5e/v6e/v7x since
    accumulation stays fp32), W3 is stored transposed for the lane-dense layer-3
    output, biases stay fp32.
    """
    w1, b1, w2, b2, w3, b3 = params
    hidden = w1.shape[1]
    out_size = w3.shape[1]
    return (w1.astype(matmul_dtype),
            b1.reshape(1, hidden).astype(jnp.float32),
            w2.astype(matmul_dtype),
            b2.reshape(1, hidden).astype(jnp.float32),
            w3.T.astype(matmul_dtype),                 # (out, hidden)
            b3.reshape(out_size, 1).astype(jnp.float32))


def critic_forward_packed(x, prepared, *, max_tile_b=4096):
    """Fused 3-layer MLP on an already-packed (B, state_dim+action_dim) input."""
    w1, b1, w2, b2, w3t, b3t = prepared
    matmul_dtype = w1.dtype
    B, in_dim = x.shape
    hidden = w1.shape[1]
    out_size = w3t.shape[0]
    in_item = jnp.dtype(matmul_dtype).itemsize

    if x.dtype != matmul_dtype:
        x = x.astype(matmul_dtype)

    # Batch tiling.
    #  * B <= max_tile_b: a single full-array block -> no (8,128) constraint,
    #    no padding, one grid step (per-step overhead ~0.35us dominates here).
    #  * Larger B: 128-multiple tiles (keeps the lane-dense output block legal
    #    and covers bf16's 16-sublane packing); prefer an even tile count so
    #    dimension_semantics=("parallel",) balances v7x's two TensorCores. The
    #    ragged last tile is handled by Pallas edge masking (rows independent,
    #    OOB output writes dropped), so no jnp.pad pass is needed.
    if B <= max_tile_b:
        tile_b, num_tiles = B, 1
    else:
        nt = pl.cdiv(B, max_tile_b)
        nt += nt % 2
        tile_b = _round_up(pl.cdiv(B, nt), 128)
        num_tiles = pl.cdiv(B, tile_b)

    weight_elems = in_dim * hidden + hidden * hidden + hidden * out_size
    flops = 2 * B * weight_elems
    bytes_accessed = (B * in_dim * in_item            # packed activations
                      + weight_elems * in_item        # weights
                      + (2 * hidden + out_size) * 4   # biases
                      + B * out_size * 4)             # output

    # Tight VMEM budget: double-buffered activation/output tiles, resident
    # params (x2 safety), fp32 intermediates (h1/h2 + transpose), small headroom.
    vmem_bytes = (2 * tile_b * in_dim * in_item
                  + 2 * out_size * tile_b * 4
                  + 2 * (weight_elems * in_item + (2 * hidden + out_size) * 4)
                  + 4 * tile_b * hidden * 4)
    vmem_limit = int(min(32 << 20, vmem_bytes + (4 << 20)))

    resident = lambda a: pl.BlockSpec(a.shape, lambda i: (0, 0))

    out_t = pl.pallas_call(
        functools.partial(_critic_kernel, matmul_dtype=matmul_dtype),
        out_shape=jax.ShapeDtypeStruct((out_size, B), jnp.float32),
        grid=(num_tiles,),
        in_specs=[
            pl.BlockSpec((tile_b, in_dim), lambda i: (i, 0)),   # packed activations
            resident(w1), resident(b1),
            resident(w2), resident(b2),
            resident(w3t), resident(b3t),
        ],
        # Lane-dense output block: batch on the lane axis.
        out_specs=pl.BlockSpec((out_size, tile_b), lambda i: (0, i)),
        compiler_params=pltpu.CompilerParams(
            dimension_semantics=("parallel",),   # megacore sharding on v7x
            vmem_limit_bytes=vmem_limit,
        ),
        cost_estimate=pl.CostEstimate(
            flops=flops, transcendentals=0, bytes_accessed=bytes_accessed),
    )(x, w1, b1, w2, b2, w3t, b3t)

    # (out, B) -> (B, out); a free reshape for the usual out_size == 1.
    return out_t.reshape(B, 1) if out_size == 1 else out_t.T


def critic_forward(state, action, prepared, *, max_tile_b=4096):
    """Critic forward: l3(relu(l2(relu(l1(cat(state, action)))))).

    state:  (B, state_dim), action: (B, action_dim).
    prepared: output of prepare_critic_params (pre-cast / pre-transposed params).
    Packs state/action into one feature stream (single fused concat+cast); use
    critic_forward_packed directly if the packed input already exists upstream.
    """
    matmul_dtype = prepared[0].dtype
    x = jnp.concatenate(
        [state.astype(matmul_dtype), action.astype(matmul_dtype)], axis=1)
    return critic_forward_packed(x, prepared, max_tile_b=max_tile_b)


def init_critic_params(key, input_size, hidden_size, output_size):
    """nn.Linear-style init (uniform +-1/sqrt(fan_in)); weights stored (in, out)."""
    ks = jax.random.split(key, 6)

    def linear(kw, kb, fan_in, fan_out):
        bound = 1.0 / jnp.sqrt(jnp.float32(fan_in))
        w = jax.random.uniform(kw, (fan_in, fan_out), jnp.float32, -bound, bound)
        b = jax.random.uniform(kb, (1, fan_out), jnp.float32, -bound, bound)
        return w, b

    w1, b1 = linear(ks[0], ks[1], input_size, hidden_size)
    w2, b2 = linear(ks[2], ks[3], hidden_size, hidden_size)
    w3, b3 = linear(ks[4], ks[5], hidden_size, output_size)
    return (w1, b1, w2, b2, w3, b3)


def critic_reference(state, action, params, *, matmul_dtype=jnp.float32):
    w1, b1, w2, b2, w3, b3 = params
    x = jnp.concatenate([state, action], axis=1).astype(matmul_dtype)
    h1 = jnp.maximum(
        jnp.dot(x, w1.astype(matmul_dtype),
                preferred_element_type=jnp.float32) + b1, 0.0)
    h2 = jnp.maximum(
        jnp.dot(h1.astype(matmul_dtype), w2.astype(matmul_dtype),
                preferred_element_type=jnp.float32) + b2, 0.0)
    return (jnp.dot(h2.astype(matmul_dtype), w3.astype(matmul_dtype),
                    preferred_element_type=jnp.float32) + b3)


if __name__ == "__main__":
    # Small shapes consistent with the module: input_size = state_dim + action_dim.
    batch = 2
    state_dim, action_dim = 24, 8
    input_size = state_dim + action_dim   # 32
    hidden_size = 32
    output_size = 1

    key = jax.random.PRNGKey(0)
    k_state, k_action, k_params, k_big = jax.random.split(key, 4)
    state = jax.random.normal(k_state, (batch, state_dim), jnp.float32)
    action = jax.random.normal(k_action, (batch, action_dim), jnp.float32)
    params = init_critic_params(k_params, input_size, hidden_size, output_size)

    # fp32 path, tiny batch -> a single full-array block (no pad, no tiling).
    p32 = prepare_critic_params(params, matmul_dtype=jnp.float32)
    out = jax.block_until_ready(critic_forward(state, action, p32))
    ref = critic_reference(state, action, params)
    assert out.shape == (batch, output_size)
    assert jnp.allclose(out, ref, atol=1e-4, rtol=1e-4), "fp32 mismatch vs reference"

    # Tiled path: B=300 with max_tile_b=128 exercises the grid + ragged edge tile.
    big_b = 300
    kb_s, kb_a = jax.random.split(k_big)
    big_state = jax.random.normal(kb_s, (big_b, state_dim), jnp.float32)
    big_action = jax.random.normal(kb_a, (big_b, action_dim), jnp.float32)
    out_big = jax.block_until_ready(
        critic_forward(big_state, big_action, p32, max_tile_b=128))
    ref_big = critic_reference(big_state, big_action, params)
    assert out_big.shape == (big_b, output_size)
    assert jnp.allclose(out_big, ref_big, atol=1e-4, rtol=1e-4), "tiled fp32 mismatch"

    # bf16-MXU default path (all generations): fp32 accumulate + fp32 bias/ReLU.
    pbf16 = prepare_critic_params(params)   # bf16 by default
    out_bf16 = jax.block_until_ready(critic_forward(big_state, big_action, pbf16))
    ref_bf16 = critic_reference(big_state, big_action, params,
                                matmul_dtype=jnp.bfloat16)
    assert out_bf16.shape == (big_b, output_size)
    assert jnp.allclose(out_bf16, ref_bf16, atol=3e-2, rtol=3e-2), "bf16 mismatch"

    print("KERNEL_OK")
</pallas_src>

<mosaic_0001>
module attributes {stable_mosaic.version = 11 : i64} {
  func.func @_critic_kernel(%arg0: i32, %arg1: memref<2x32xf32, #tpu.memory_space<vmem>>, %arg2: memref<32x32xf32, #tpu.memory_space<vmem>>, %arg3: memref<1x32xf32, #tpu.memory_space<vmem>>, %arg4: memref<32x32xf32, #tpu.memory_space<vmem>>, %arg5: memref<1x32xf32, #tpu.memory_space<vmem>>, %arg6: memref<1x32xf32, #tpu.memory_space<vmem>>, %arg7: memref<1x1xf32, #tpu.memory_space<vmem>>, %arg8: memref<1x2xf32, #tpu.memory_space<vmem>>) attributes {dimension_semantics = [#tpu.dimension_semantics<parallel>], iteration_bounds = array<i64: 1>, scalar_prefetch = 0 : i64, scratch_operands = 0 : i64, tpu.core_type = #tpu.core_type<tc>, window_params = [{transform_indices = @transform_0, window_bounds = array<i64: 2, 32>}, {pipeline_mode = #tpu.pipeline_mode<synchronous>, transform_indices = @transform_1, window_bounds = array<i64: 32, 32>}, {pipeline_mode = #tpu.pipeline_mode<synchronous>, transform_indices = @transform_2, window_bounds = array<i64: 1, 32>}, {pipeline_mode = #tpu.pipeline_mode<synchronous>, transform_indices = @transform_3, window_bounds = array<i64: 32, 32>}, {pipeline_mode = #tpu.pipeline_mode<synchronous>, transform_indices = @transform_4, window_bounds = array<i64: 1, 32>}, {pipeline_mode = #tpu.pipeline_mode<synchronous>, transform_indices = @transform_5, window_bounds = array<i64: 1, 32>}, {pipeline_mode = #tpu.pipeline_mode<synchronous>, transform_indices = @transform_6, window_bounds = array<i64: 1, 1>}, {transform_indices = @transform_7, window_bounds = array<i64: 1, 2>}]} {
    %c0 = arith.constant 0 : index
    %c0_0 = arith.constant 0 : index
    %0 = vector.load %arg1[%c0, %c0_0] : memref<2x32xf32, #tpu.memory_space<vmem>>, vector<2x32xf32>
    %c0_1 = arith.constant 0 : index
    %c0_2 = arith.constant 0 : index
    %1 = vector.load %arg2[%c0_1, %c0_2] : memref<32x32xf32, #tpu.memory_space<vmem>>, vector<32x32xf32>
    %cst = arith.constant dense<0.000000e+00> : vector<2x32xf32>
    %2 = tpu.matmul %0, %1, %cst {dimension_numbers = #tpu.dot_dimension_numbers<[1], [0], [0], [1], [0, 0, 1, 1], [], []>} : vector<2x32xf32>, vector<32x32xf32>, vector<2x32xf32> -> vector<2x32xf32>
    %c0_3 = arith.constant 0 : index
    %c0_4 = arith.constant 0 : index
    %3 = vector.load %arg3[%c0_3, %c0_4] : memref<1x32xf32, #tpu.memory_space<vmem>>, vector<1x32xf32>
    %4 = vector.broadcast %3 : vector<1x32xf32> to vector<2x32xf32>
    %5 = arith.addf %2, %4 : vector<2x32xf32>
    %cst_5 = arith.constant 0.000000e+00 : f32
    %6 = vector.broadcast %cst_5 : f32 to vector<2x32xf32>
    %7 = arith.maximumf %5, %6 : vector<2x32xf32>
    %c0_6 = arith.constant 0 : index
    %c0_7 = arith.constant 0 : index
    %8 = vector.load %arg4[%c0_6, %c0_7] : memref<32x32xf32, #tpu.memory_space<vmem>>, vector<32x32xf32>
    %cst_8 = arith.constant dense<0.000000e+00> : vector<2x32xf32>
    %9 = tpu.matmul %7, %8, %cst_8 {dimension_numbers = #tpu.dot_dimension_numbers<[1], [0], [0], [1], [0, 0, 1, 1], [], []>} : vector<2x32xf32>, vector<32x32xf32>, vector<2x32xf32> -> vector<2x32xf32>
    %c0_9 = arith.constant 0 : index
    %c0_10 = arith.constant 0 : index
    %10 = vector.load %arg5[%c0_9, %c0_10] : memref<1x32xf32, #tpu.memory_space<vmem>>, vector<1x32xf32>
    %11 = vector.broadcast %10 : vector<1x32xf32> to vector<2x32xf32>
    %12 = arith.addf %9, %11 : vector<2x32xf32>
    %cst_11 = arith.constant 0.000000e+00 : f32
    %13 = vector.broadcast %cst_11 : f32 to vector<2x32xf32>
    %14 = arith.maximumf %12, %13 : vector<2x32xf32>
    %15 = tpu.transpose %14, [1, 0] : vector<2x32xf32> -> vector<32x2xf32>
    %c0_12 = arith.constant 0 : index
    %c0_13 = arith.constant 0 : index
    %16 = vector.load %arg6[%c0_12, %c0_13] : memref<1x32xf32, #tpu.memory_space<vmem>>, vector<1x32xf32>
    %cst_14 = arith.constant dense<0.000000e+00> : vector<1x2xf32>
    %17 = tpu.matmul %16, %15, %cst_14 {dimension_numbers = #tpu.dot_dimension_numbers<[1], [0], [0], [1], [0, 0, 1, 1], [], []>} : vector<1x32xf32>, vector<32x2xf32>, vector<1x2xf32> -> vector<1x2xf32>
    %c0_15 = arith.constant 0 : index
    %c0_16 = arith.constant 0 : index
    %18 = vector.load %arg7[%c0_15, %c0_16] : memref<1x1xf32, #tpu.memory_space<vmem>>, vector<1x1xf32>
    %19 = vector.broadcast %18 : vector<1x1xf32> to vector<1x2xf32>
    %20 = arith.addf %17, %19 : vector<1x2xf32>
    %c0_17 = arith.constant 0 : index
    %c0_18 = arith.constant 0 : index
    %21 = vector.load %arg8[%c0_17, %c0_18] : memref<1x2xf32, #tpu.memory_space<vmem>>, vector<1x2xf32>
    tpu.vector_store %arg8[%c0_17, %c0_18], %20 {strides = array<i32>} : memref<1x2xf32, #tpu.memory_space<vmem>>, vector<1x2xf32>,
    return
  }
  func.func @transform_0(%arg0: i32) -> (i32, i32) {
    %c0_i32 = arith.constant 0 : i32
    %c0_i32_0 = arith.constant 0 : i32
    return %arg0, %c0_i32 : i32, i32
  }
  func.func @transform_1(%arg0: i32) -> (i32, i32) {
    %c0_i32 = arith.constant 0 : i32
    %c0_i32_0 = arith.constant 0 : i32
    %c0_i32_1 = arith.constant 0 : i32
    return %c0_i32, %c0_i32_0 : i32, i32
  }
  func.func @transform_2(%arg0: i32) -> (i32, i32) {
    %c0_i32 = arith.constant 0 : i32
    %c0_i32_0 = arith.constant 0 : i32
    %c0_i32_1 = arith.constant 0 : i32
    return %c0_i32, %c0_i32_0 : i32, i32
  }
  func.func @transform_3(%arg0: i32) -> (i32, i32) {
    %c0_i32 = arith.constant 0 : i32
    %c0_i32_0 = arith.constant 0 : i32
    %c0_i32_1 = arith.constant 0 : i32
    return %c0_i32, %c0_i32_0 : i32, i32
  }
  func.func @transform_4(%arg0: i32) -> (i32, i32) {
    %c0_i32 = arith.constant 0 : i32
    %c0_i32_0 = arith.constant 0 : i32
    %c0_i32_1 = arith.constant 0 : i32
    return %c0_i32, %c0_i32_0 : i32, i32
  }
  func.func @transform_5(%arg0: i32) -> (i32, i32) {
    %c0_i32 = arith.constant 0 : i32
    %c0_i32_0 = arith.constant 0 : i32
    %c0_i32_1 = arith.constant 0 : i32
    return %c0_i32, %c0_i32_0 : i32, i32
  }
  func.func @transform_6(%arg0: i32) -> (i32, i32) {
    %c0_i32 = arith.constant 0 : i32
    %c0_i32_0 = arith.constant 0 : i32
    %c0_i32_1 = arith.constant 0 : i32
    return %c0_i32, %c0_i32_0 : i32, i32
  }
  func.func @transform_7(%arg0: i32) -> (i32, i32) {
    %c0_i32 = arith.constant 0 : i32
    %c0_i32_0 = arith.constant 0 : i32
    return %c0_i32, %arg0 : i32, i32
  }
}

</mosaic_0001>

<bundles_post_ra>
// kernel: tpu_custom_call.1
= control target key start
LH: loop header
LB: loop body
LE: loop exit
PB: predicated region body
PF: predicated region fallthrough
CT: control target
= control target key end

     0   :  { %s580_s0 = inlined_call_operand.vmem [shape: f32[2,32], index: 0, kind: input, shape index: {}]   ;;  %s581_s1 = inlined_call_operand.hbm [shape: f32[32,32], index: 1, kind: input, shape index: {}]   ;;  %s582_s2 = inlined_call_operand.vmem [shape: f32[1,32], index: 2, kind: input, shape index: {}]   ;;  %s583_s3 = inlined_call_operand.hbm [shape: f32[32,32], index: 3, kind: input, shape index: {}]   ;;  %s584_s4 = inlined_call_operand.vmem [shape: f32[1,32], index: 4, kind: input, shape index: {}]   ;;  %s585_s5 = inlined_call_operand.vmem [shape: f32[1,32], index: 5, kind: input, shape index: {}]   ;;  %s586_s6 = inlined_call_operand.<no memory space> [shape: f32[1,1], index: 6, kind: input, shape index: {}]   ;;  %s587_s7 = inlined_call_operand.hbm [shape: f32[1,2], index: 7, kind: output, shape index: {}]  }
   0x1   :  { %v12_v0 = vstv %s586_s6 }
   0x2   :  { %13 = vst [vmem:[#allocation2] sm:$0x1] %v12_v0 }
   0x3   :  { %14 = vsyncpa [#allocation4], 0 }
   0x4   :  { %15 = vsyncpa [#allocation7], 0 }
   0x5   :  { %16 = vsyncpa [#allocation5], 0  ;;  %s473_s26 = smov [#allocation3]   ;;  %s401_s30 = scalar_lea.hbm %s581_s1, 512 }
   0x6   :  { %s24_s27 = sshll.u32 %s473_s26, 4  ;;  %p402_p0 = scmp.ne.s32.totalorder %s581_s1, %s401_s30  ;;  %s25_s27 = int_to_ptr.vmem [resolvable:$true] %s24_s27 }
   0x7   :  { %p405_p1 = scmp.lt.u32.totalorder %s401_s30, %s581_s1 }
   0x9   :  { %p407_p2 = pnand %p405_p1, %p402_p0 }
   0xb   :  { %410 = shalt.err (!%p407_p2)
}
   0xc   :  { %s411_s6 = scalar_lea.vmem %s25_s27, 512  ;;  %p416_p4 = scmp.lt.s32.totalorder %s25_s27, %s25_s27 }
   0xd   :  { %p412_p3 = scmp.ne.s32.totalorder %s25_s27, %s411_s6  ;;  %p417_p5 = scmp.lt.s32.totalorder %s411_s6, %s411_s6 }
   0xf   :  { %p418_p6 = por %p417_p5, %p416_p4 }
  0x11   :  { %p419_p7 = pnand %p418_p6, %p412_p3 }
  0x13   :  { %422 = shalt.err (!%p419_p7)
}
  0x14   :  { %s474_s12 = smov 128   ;;  %s475_s13 = smov 8  }
  0x15   :  { %30 = dma.hbm_to_vmem [thread:$0]  %s581_s1, 512, %s25_s27, [#allocation4], %s474_s12, %s474_s12, %s475_s13  }
  0x16   :  { %s476_s16 = smov [#allocation6]   ;;  %s423_s20 = scalar_lea.hbm %s583_s3, 512 }
  0x17   :  { %s38_s17 = sshll.u32 %s476_s16, 4  ;;  %p424_p8 = scmp.ne.s32.totalorder %s583_s3, %s423_s20  ;;  %s39_s17 = int_to_ptr.vmem [resolvable:$true] %s38_s17 }
  0x18   :  { %p427_p9 = scmp.lt.u32.totalorder %s423_s20, %s583_s3 }
  0x1a   :  { %p429_p10 = pnand %p427_p9, %p424_p8 }
  0x1c   :  { %432 = shalt.err (!%p429_p10)
}
  0x1d   :  { %s433_s25 = scalar_lea.vmem %s39_s17, 512  ;;  %p438_p12 = scmp.lt.s32.totalorder %s39_s17, %s39_s17 }
  0x1e   :  { %p434_p11 = scmp.ne.s32.totalorder %s39_s17, %s433_s25  ;;  %p439_p13 = scmp.lt.s32.totalorder %s433_s25, %s433_s25 }
  0x20   :  { %p440_p0 = por %p439_p13, %p438_p12 }
  0x22   :  { %p441_p1 = pnand %p440_p0, %p434_p11 }
  0x24   :  { %444 = shalt.err (!%p441_p1)
}
  0x25   :  { %44 = dma.hbm_to_vmem [thread:$0]  %s583_s3, 512, %s39_s17, [#allocation7], %s474_s12, %s474_s12, %s475_s13  }
  0x26   :  { %467 = dma.done.wait [#allocation4], 512  }
  0x27   :  { %468 = vsyncadd [#allocation4], 4294966784 }
  0x28   :  { %469 = dma.done.wait [#allocation7], 512  }
  0x29   :  { %470 = vsyncadd [#allocation7], 4294966784  ;;  %v477_v1 = vmov 0.0|0.0   ;;  %vm478_vm0 = vmmov 0   ;;  %v479_v2 = vmov 0.0   ;;  %v58_v3 = vld [vmem:[#allocation3] sm:$0xff]  ;;  %v236_v29 = vlaneseq }
  0x2a   :  { %379 = vmatprep.subr.bf16.mxu0 %v477_v1  ;;  %360 = vmatprep.mubr.msk.f32.mxu0 %vm478_vm0, %v479_v2  ;;  %v59_v4 = vld [vmem:[#allocation3 + $0x8] sm:$0xff]  ;;  %v60_v5 = vld [vmem:[#allocation3 + $0x10] sm:$0xff]  ;;  %v61_v7 = vld [vmem:[#allocation3 + $0x18] sm:$0xff]  ;;  %vm69_vm1 = vcmask 261120   ;;  %v480_v22 = vmov 0   ;;  %s481_s9 = smov [#allocation8]  }
  0x2b   :  { %385 = vmatprep.subr.bf16.mxu1 %v477_v1  ;;  %371 = vmatprep.mubr.msk.f32.mxu1 %vm478_vm0, %v479_v2  ;;  %v380_v6 = vpack.c.bf16 %v59_v4, %v58_v3  ;;  %v144_v8 = vld [vmem:[#allocation6] sm:$0xff]  ;;  %v145_v9 = vld [vmem:[#allocation6 + $0x8] sm:$0xff]  ;;  %v383_v10 = vpack.c.bf16 %v61_v7, %v60_v5  ;;  %v146_v13 = vld [vmem:[#allocation6 + $0x10] sm:$0xff]  ;;  %v237_v30 = vshrl.u32 %v236_v29, 7  ;;  %s324_s10 = sshll.u32 %s481_s9, 4  ;;  %vm316_vm2 = vcmask 8192   ;;  %s325_s10 = int_to_ptr.vmem [resolvable:$true] %s324_s10 }
  0x2c   :  { %v386_v11 = vpack.c.bf16 %v145_v9, %v144_v8  ;;  %v57_v12 = vld [vmem:[%s580_s0] sm:$0x3]  ;;  %400 = vset.pattern.permute.xlu0 %v480_v22  ;;  %s449_s11 = scalar_lea.vmem %s325_s10, 32  ;;  %p450_p3 = scmp.lt.s32.totalorder %s325_s10, %s325_s10 }
  0x2d   :  { %381 = vmatpush3.bf16.msra.mxu0 %v380_v6  ;;  %v147_v14 = vld [vmem:[#allocation6 + $0x18] sm:$0xff]  ;;  %v238_v31 = vsub.s32 0, %v237_v30 }
  0x2e   :  { %382 = vmatprep.subr.bf16.mxu0 %v477_v1  ;;  %387 = vmatpush3.bf16.msra.mxu1 %v386_v11  ;;  %v389_v15 = vpack.c.bf16 %v147_v14, %v146_v13  ;;  %v334_v16 = vld [vmem:[%s582_s2] ss:$0 sm:$0xff] }
  0x2f   :  { %388 = vmatprep.subr.bf16.mxu1 %v477_v1  ;;  %v230_v21 = vld [vmem:[#allocation2] sm:$0x1] }
  0x30   :  { %233 = vperm.xlu0 %400, %v230_v21   ;;  %v336_v23 = vld [vmem:[%s584_s4] ss:$0 sm:$0xff]  ;;  %s445_s4 = scalar_lea.vmem %s325_s10, 16 }
  0x31   :  { %384 = vmatpush3.bf16.msra.mxu0 %v383_v10  ;;  %v229_v28 = vld [vmem:[%s585_s5] sm:$0x1]  ;;  %p446_p2 = scmp.ne.s32.totalorder %s325_s10, %s445_s4  ;;  %p451_p4 = scmp.lt.s32.totalorder %s449_s11, %s445_s4 }
  0x32   :  { %374 = vmatprep.subr.mxu0 %v479_v2  ;;  %390 = vmatpush3.bf16.msra.mxu1 %v389_v15 }
  0x33   :  { %p452_p5 = por %p451_p4, %p450_p3 }
  0x34   :  { %361 = vmatmul.mubr.msk.f32.vlgmr.msra.gmra.mrb[0].mxu0 %vm69_vm1, %v57_v12 }
  0x35   :  { %376 = vmatprep.mubr.msk.f32.mxu0 %vm478_vm0, %v479_v2  ;;  %p453_p6 = pnand %p452_p5, %p446_p2 }
  0xaf   :  { %v234_v32 = vpop.permute.xlu0 %233 }
  0xb0   :  { %v239_v33 = vrot.slane %v234_v32, %v238_v31 }
 0x107   :  { %v139_v17 = vpop.f32.mrb[0].mxu0 }
 0x108   :  { %v140_v18 = vadd.f32 %v334_v16, %v139_v17  ;;  %v362_v19 = vpop.f32.mrb[1].mxu0 }
 0x10a   :  { %v143_v20 = vmax.f32 %v140_v18, 0.0 }
 0x10c   :  { %372 = vmatmul.mubr.msk.f32.vlgmr.msra.gmra.mrb[0].mxu1 %vm69_vm1, %v143_v20 }
 0x1df   :  { %v224_v24 = vpop.f32.mrb[0].mxu1 }
 0x1e0   :  { %v225_v25 = vadd.f32 %v336_v23, %v224_v24  ;;  %v373_v26 = vpop.f32.mrb[1].mxu1 }
 0x1e2   :  { %v228_v27 = vmax.f32 %v225_v25, 0.0 }
 0x1e4   :  { %375 = vmatpush3.xpose.msk.msra.mxu0 %vm69_vm1, %v228_v27 }
 0x1e7   :  { %377 = vmatmul.mubr.msk.f32.vlgmr.msra.gmra.mrb[2].mxu0 %vm69_vm1, %v229_v28 }
 0x2ba   :  { %v312_v34 = vpop.f32.mrb[2].mxu0 }
 0x2bb   :  { %v313_v35 = vadd.f32 %v312_v34, %v239_v33  ;;  %v378_v36 = vpop.f32.mrb[3].mxu0 }
 0x2bd   :  { %317 = vst.msk [vmem:[#allocation8] sm:$0x1] %vm316_vm2, %v313_v35 }
 0x2be   :  { %456 = shalt.err (!%p453_p6)
}
 0x2bf   :  { %s457_s12 = scalar_lea.hbm %s587_s7, 16 }
 0x2c0   :  { %p458_p7 = scmp.ne.s32.totalorder %s587_s7, %s457_s12  ;;  %p461_p8 = scmp.lt.u32.totalorder %s457_s12, %s587_s7 }
 0x2c2   :  { %p463_p9 = pnand %p461_p8, %p458_p7 }
 0x2c4   :  { %466 = shalt.err (!%p463_p9)
}
 0x2c5   :  { %327 = dma.vmem_to_hbm [thread:$0]  %s325_s10, 16, %s587_s7, [#allocation5]  }
 0x2c6   :  { %471 = dma.done.wait [#allocation5], 16  }
 0x2c7   :  { %472 = vsyncadd [#allocation5], 4294967280 }
 0x2c8   :  { %331 = vsyncpa [#allocation4], 1 }
 0x2c9   :  { %332 = vsyncpa [#allocation7], 1 }
 0x2ca   :  { %333 = vsyncpa [#allocation5], 1 }

</bundles_post_ra>
